<compile_context>
chip_gen: v7x
topology: tpu7x:2x2x1
jax: 0.10.0
libtpu: 0.0.40
codegen_flags: <defaults>
</compile_context>

<pallas_src>
import jax
import jax.numpy as jnp
from jax.experimental import pallas as pl
from jax.experimental.pallas import tpu as pltpu

_LANE = 128


def _sublane_pack(dtype):
    itemsize = jnp.dtype(dtype).itemsize
    if itemsize >= 4:
        return 8
    return 8 * (4 // itemsize)        # 16 for bf16/fp16, 32 for int8/fp8


def _vmem_budget():
    """Return (per-output-block byte target, vmem_limit_bytes), generation aware."""
    target, limit = 4 * 1024 * 1024, 32 * 1024 * 1024      # safe on v7x (64 MiB VMEM)
    try:
        vmem = int(pltpu.get_tpu_info().vmem_capacity_bytes)
        if vmem >= 128 * 1024 * 1024:                       # v5e / v6e
            target, limit = 8 * 1024 * 1024, 64 * 1024 * 1024
    except Exception:
        pass                                                # conservative default
    return target, limit


def _largest_divisor_leq(n, k):
    k = max(1, min(int(k), int(n)))
    for d in range(k, 0, -1):
        if n % d == 0:
            return d
    return 1


# ---------------------------------------------------------------------------
# Kernels
# ---------------------------------------------------------------------------

def _glu_tiled_kernel(x_ref, o_ref):
    # x_ref block: (bn, 2, rt, L) ; o_ref block: (bn, rt, L)
    x = x_ref[...]
    a = x[:, 0]                        # gated values
    b = x[:, 1]                        # gate logits
    o_ref[...] = (a * jax.nn.sigmoid(b)).astype(o_ref.dtype)


def _glu_fallback_kernel(a_ref, b_ref, o_ref):
    # a_ref / b_ref blocks: (1, 1, ct, lt) ; o_ref block: (1, ct, lt)
    o_ref[0] = (a_ref[0, 0] * jax.nn.sigmoid(b_ref[0, 0])).astype(o_ref.dtype)


# ---------------------------------------------------------------------------
# Layout selection
# ---------------------------------------------------------------------------

def _pick_layout(per_half, N, dtype, target_bytes):
    """Factor per_half = R * L (L a multiple of 128), pick row tile rt and a
    batch block bn.  Returns None if per_half is not a multiple of 128."""
    if per_half % _LANE != 0:
        return None
    itemsize = jnp.dtype(dtype).itemsize
    sub = _sublane_pack(dtype)

    # Prefer factorizations whose row count fills whole (sub, 128) tiles.
    lane = None
    for cand in (2048, 1024, 512, 256, _LANE):
        if per_half % cand == 0 and per_half // cand >= sub:
            lane = cand
            break
    if lane is None:
        lane = _LANE                   # maximize rows; per_half % 128 == 0 holds
    rows = per_half // lane

    # Row tile: multiple of the dtype's sublane packing, sized to the target.
    max_rows = max(sub, target_bytes // (lane * itemsize))
    if rows <= max_rows:
        rt = rows                      # full extent (always legal)
    else:
        rt = max(sub, (min(max_rows, rows) // sub) * sub)

    # Batch-extend the block when one image's half is far below the target.
    bn = 1
    if rt == rows:
        block_bytes = rows * lane * itemsize
        want = target_bytes // max(block_bytes, 1)
        if want > 1 and N > 1:
            bn = _largest_divisor_leq(N, min(want, N))

    # Keep >= 2 grid steps so v7x's two TensorCores both get work.
    def _steps(bn_, rt_):
        return (-(-N // bn_)) * (-(-rows // rt_))

    if _steps(bn, rt) < 2:
        if bn > 1:
            bn = _largest_divisor_leq(N, bn // 2)
        elif N == 1 and rows >= 2 * sub:
            rt = max(sub, ((rows // 2) // sub) * sub)

    return rows, lane, rt, bn


# ---------------------------------------------------------------------------
# Wrappers
# ---------------------------------------------------------------------------

def _glu_fallback(x, N, nc, H, W, target_bytes, vmem_limit):
    """Per-half size not a multiple of 128: tile over (batch, channel, spatial)."""
    hw = H * W
    itemsize = jnp.dtype(x.dtype).itemsize
    sub = _sublane_pack(x.dtype)
    hw_pad = (-(-hw // _LANE)) * _LANE
    x4 = x.reshape(N, 2, nc, hw)       # contiguous, free

    # Lane tile: full hw if a sub-row slab fits the target, else a 128-multiple.
    if hw_pad * sub * itemsize <= target_bytes:
        lt, lt_pad = hw, hw_pad
    else:
        lt = max(_LANE, (target_bytes // (sub * itemsize) // _LANE) * _LANE)
        lt_pad = lt

    # Channel tile: full nc if it fits, else a multiple of the sublane packing.
    max_ct = max(1, target_bytes // (lt_pad * itemsize))
    if nc <= max_ct or nc <= sub:
        ct = nc
    else:
        ct = max(sub, (min(max_ct, nc) // sub) * sub)

    out3 = pl.pallas_call(
        _glu_fallback_kernel,
        out_shape=jax.ShapeDtypeStruct((N, nc, hw), x.dtype),
        grid=(N, pl.cdiv(nc, ct), pl.cdiv(hw, lt)),
        in_specs=[
            pl.BlockSpec((1, 1, ct, lt), lambda n, c, l: (n, 0, c, l)),
            pl.BlockSpec((1, 1, ct, lt), lambda n, c, l: (n, 1, c, l)),
        ],
        out_specs=pl.BlockSpec((1, ct, lt), lambda n, c, l: (n, c, l)),
        compiler_params=pltpu.CompilerParams(
            dimension_semantics=("parallel", "parallel", "parallel"),
            vmem_limit_bytes=vmem_limit,
        ),
    )(x4, x4)                           # same array twice: each spec reads its own half
    return out3.reshape(N, nc, H, W)


def glu(x):
    """x: (N, C, H, W), C even. Returns x[:, :C//2] * sigmoid(x[:, C//2:])."""
    N, C, H, W = x.shape
    assert C % 2 == 0, "channels dont divide 2!"
    nc = C // 2
    per_half = nc * H * W
    target_bytes, vmem_limit = _vmem_budget()

    layout = _pick_layout(per_half, N, x.dtype, target_bytes)
    if layout is None:
        return _glu_fallback(x, N, nc, H, W, target_bytes, vmem_limit)

    R, L, rt, bn = layout
    # (N, C, H, W) -> (N, 2, R, L): contiguous, no copy; half index on its own axis.
    x4 = x.reshape(N, 2, R, L)

    out3 = pl.pallas_call(
        _glu_tiled_kernel,
        out_shape=jax.ShapeDtypeStruct((N, R, L), x.dtype),
        grid=(pl.cdiv(N, bn), pl.cdiv(R, rt)),
        # Single fused input block carries both halves (one DMA descriptor).
        in_specs=[pl.BlockSpec((bn, 2, rt, L), lambda n, r: (n, 0, r, 0))],
        out_specs=pl.BlockSpec((bn, rt, L), lambda n, r: (n, r, 0)),
        compiler_params=pltpu.CompilerParams(
            dimension_semantics=("parallel", "parallel"),
            vmem_limit_bytes=vmem_limit,
        ),
    )(x4)
    return out3.reshape(N, nc, H, W)


if __name__ == "__main__":
    key = jax.random.PRNGKey(0)
    k0, k1, k2 = jax.random.split(key, 3)

    # Fast path, f32 (NCHW: batch=2, channels=4, spatial=16x16).
    x = jax.random.normal(k0, (2, 4, 16, 16), dtype=jnp.float32)
    out = jax.block_until_ready(glu(x))
    nc = x.shape[1] // 2
    ref = x[:, :nc] * jax.nn.sigmoid(x[:, nc:])
    assert out.shape == (2, 2, 16, 16)
    assert jnp.allclose(out, ref, atol=1e-6, rtol=1e-6)

    # Fallback path (per-half element count not a multiple of 128).
    x2 = jax.random.normal(k1, (2, 6, 7, 9), dtype=jnp.float32)
    out2 = jax.block_until_ready(glu(x2))
    ref2 = x2[:, :3] * jax.nn.sigmoid(x2[:, 3:])
    assert out2.shape == (2, 3, 7, 9)
    assert jnp.allclose(out2, ref2, atol=1e-6, rtol=1e-6)

    # bf16 fast path (gate computed in bf16, matching half-precision GLU).
    xb = jax.random.normal(k2, (2, 4, 16, 16), dtype=jnp.bfloat16)
    outb = jax.block_until_ready(glu(xb))
    refb = xb[:, :2] * jax.nn.sigmoid(xb[:, 2:])
    assert jnp.allclose(outb.astype(jnp.float32), refb.astype(jnp.float32),
                        atol=2e-2, rtol=2e-2)

    print("KERNEL_OK")
</pallas_src>

<mosaic_0001>
module attributes {stable_mosaic.version = 11 : i64} {
  func.func @_glu_tiled_kernel(%arg0: i32, %arg1: i32, %arg2: memref<1x2x4x128xf32, #tpu.memory_space<vmem>>, %arg3: memref<1x4x128xf32, #tpu.memory_space<vmem>>) attributes {dimension_semantics = [#tpu.dimension_semantics<parallel>, #tpu.dimension_semantics<parallel>], iteration_bounds = array<i64: 2, 1>, scalar_prefetch = 0 : i64, scratch_operands = 0 : i64, tpu.core_type = #tpu.core_type<tc>, window_params = [{transform_indices = @transform_0, window_bounds = array<i64: 1, 2, 4, 128>}, {transform_indices = @transform_1, window_bounds = array<i64: 1, 4, 128>}]} {
    %c0 = arith.constant 0 : index
    %c0_0 = arith.constant 0 : index
    %c0_1 = arith.constant 0 : index
    %c0_2 = arith.constant 0 : index
    %0 = vector.load %arg2[%c0, %c0_0, %c0_1, %c0_2] : memref<1x2x4x128xf32, #tpu.memory_space<vmem>>, vector<1x2x4x128xf32>
    %1 = vector.extract_strided_slice %0 {offsets = [0, 0, 0, 0], sizes = [1, 1, 4, 128], strides = [1, 1, 1, 1]} : vector<1x2x4x128xf32> to vector<1x1x4x128xf32>
    %2 = vector.shape_cast %1 : vector<1x1x4x128xf32> to vector<1x4x128xf32>
    %3 = vector.extract_strided_slice %0 {offsets = [0, 1, 0, 0], sizes = [1, 1, 4, 128], strides = [1, 1, 1, 1]} : vector<1x2x4x128xf32> to vector<1x1x4x128xf32>
    %4 = vector.shape_cast %3 : vector<1x1x4x128xf32> to vector<1x4x128xf32>
    %5 = arith.negf %4 : vector<1x4x128xf32>
    %6 = math.exp %5 : vector<1x4x128xf32>
    %cst = arith.constant 1.000000e+00 : f32
    %7 = vector.broadcast %cst : f32 to vector<1x4x128xf32>
    %8 = arith.addf %7, %6 : vector<1x4x128xf32>
    %9 = arith.divf %7, %8 : vector<1x4x128xf32>
    %10 = arith.mulf %2, %9 : vector<1x4x128xf32>
    %c0_3 = arith.constant 0 : index
    %c0_4 = arith.constant 0 : index
    %c0_5 = arith.constant 0 : index
    %11 = vector.load %arg3[%c0_3, %c0_4, %c0_5] : memref<1x4x128xf32, #tpu.memory_space<vmem>>, vector<1x4x128xf32>
    tpu.vector_store %arg3[%c0_3, %c0_4, %c0_5], %10 {strides = array<i32>} : memref<1x4x128xf32, #tpu.memory_space<vmem>>, vector<1x4x128xf32>,
    return
  }
  func.func @transform_0(%arg0: i32, %arg1: i32) -> (i32, i32, i32, i32) {
    %c0_i32 = arith.constant 0 : i32
    %c0_i32_0 = arith.constant 0 : i32
    %c0_i32_1 = arith.constant 0 : i32
    return %arg0, %c0_i32, %arg1, %c0_i32_0 : i32, i32, i32, i32
  }
  func.func @transform_1(%arg0: i32, %arg1: i32) -> (i32, i32, i32) {
    %c0_i32 = arith.constant 0 : i32
    %c0_i32_0 = arith.constant 0 : i32
    return %arg0, %arg1, %c0_i32 : i32, i32, i32
  }
}

</mosaic_0001>

<bundles_post_ra>
// kernel: tpu_custom_call.1
= control target key start
LH: loop header
LB: loop body
LE: loop exit
PB: predicated region body
PF: predicated region fallthrough
CT: control target
= control target key end

     0   :  { %6 = vsyncpa [#allocation3], 0  ;;  %s644_s0 = inlined_call_operand.hbm [shape: f32[2,2,4,128], index: 0, kind: input, shape index: {}]   ;;  %s645_s1 = inlined_call_operand.hbm [shape: f32[2,4,128], index: 1, kind: output, shape index: {}]  }
   0x1   :  { %8 = vsyncpa [#allocation3 + $0x1], 0 }
   0x2   :  { %9 = vsyncpa [#allocation4], 0 }
   0x3   :  { %11 = vsyncpa [#allocation4 + $0x1], 0  ;;  %s470_s6 = smov 0   ;;  %s472_s7 = smov 0  }
   0x4   :  { %s474_s8 = smov 0   ;;  %s476_s9 = smov 0  }
   0x5   :  { %s478_s10 = smov 0   ;;  %s480_s11 = smov 0  }
   0x6 LB: > { %s258_s12 = sadd.s32 4294967295, %s454_s11   ;;  %s259_s13 = sadd.s32 4294967294, %s454_s11   ;;  %s454_s11 = sphi %s480_s11, %s17_s11   ;;  %s450_s10 = sphi %s478_s10, %s660_s10   ;;  %s446_s9 = sphi %s476_s9, %s659_s9   ;;  %s442_s8 = sphi %s474_s8, %s658_s8   ;;  %s438_s7 = sphi %s472_s7, %s657_s7   ;;  %s434_s6 = sphi %s470_s6, %s656_s6  }
   0x7   : > { %s29_s14 = sadd.s32 1, %s450_s10  ;;  %s38_s15 = sadd.s32 1, %s442_s8 }
   0x8   : > { %p31_p0 = scmp.ge.s32.totalorder %s29_s14, 2  ;;  %p45_p1 = scmp.ne.s32.totalorder %s442_s8, %s438_s7 }
   0x9   : > { %p46_p2 = scmp.eq.s32.totalorder %s454_s11, 0  ;;  %p51_p3 = scmp.ne.s32.totalorder %s438_s7, %s434_s6 }
   0xa   : > { %s662_s14 = smov (%p31_p0, %s29_s14), 0  ;;  %p52_p5 = scmp.eq.s32.totalorder %s258_s12, 0 }
   0xb   : > { %p511_p4 = por %p46_p2, %p45_p1  ;;  %s33_s17 = ssub.s32 %s450_s10, %s662_s14 }
   0xc   : > { %p77_p6 = scmp.eq.s32.totalorder %s258_s12, 1  ;;  %p36_p7 = scmp.eq.s32.totalorder %s33_s17, 0 }
   0xd   : > { %p517_p8 = por %p52_p5, %p51_p3  ;;  %p83_p10 = scmp.eq.s32.totalorder %s259_s13, 1 }
   0xe   : > { %p521_p9 = por %p77_p6, %p45_p1  ;;  %p286_p13 = scmp.lt.s32.totalorder %s454_s11, 2 }
   0xf   : > { %s526_s20 = scalar_select %p36_p7, %s442_s8, %s38_s15  }
  0x10   : > { %s649_s19 = scalar_select %p521_p9, 1, 0 }
  0x11   : > { %p528_p11 = por %p83_p10, %p51_p3  ;;  %s103_s22 = sand.u32 1, %s442_s8  }
  0x12   : > { %s262_s23 = sshll.u32 %s103_s22, 3  ;;  %s273_s24 = sshll.u32 %s450_s10, 7 }
  0x13   : > { %s650_s21 = scalar_select %p528_p11, 1, 0 }
  0x14   : > { %s539_s27 = scalar_lea.hbm %s644_s0, %s273_s24  ;;  %s107_s28 = scalar_lea.vmem [#allocation2], %s262_s23 }
  0x15   : > { %s115_s29 = sshll.u32 %s107_s28, 4  ;;  %p545_p0 = pnand %p286_p13, %p511_p4  ;;  %s541_s29 = int_to_ptr.vmem [resolvable:$true] %s115_s29 }
  0x16   : > { %s550_s2 = scalar_lea.sflag [#allocation3], %s103_s22  ;;  %s342_s3 = scalar_lea.hbm %s539_s27, 128 }
  0x17   : > { %p343_p2 = scmp.ne.s32.totalorder %s539_s27, %s342_s3  ;;  %p344_p3 = pneg %p545_p0 }
  0x18   : > { %s347_s12 = scalar_lea.hbm %s644_s0, 256  ;;  %p348_p4 = scmp.lt.u32.totalorder %s539_s27, %s644_s0 }
  0x19   : > { %p345_p5 = pnand %p344_p3, %p343_p2  ;;  %p349_p7 = scmp.lt.u32.totalorder %s347_s12, %s342_s3 }
  0x1a   : > { %p351_p13 = scmp.lt.u32.totalorder %s342_s3, %s539_s27 }
  0x1b   : > { %p346_p6 = pneg %p345_p5  ;;  %p350_p10 = por %p349_p7, %p348_p4 }
  0x1d   : > { %p352_p12 = por %p351_p13, %p350_p10 }
  0x1f   : > { %p353_p1 = pnand %p352_p12, %p346_p6 }
  0x21   : > { %356 = shalt.err (!%p353_p1)
}
  0x22   : > { %s357_s16 = scalar_lea.vmem %s541_s29, 128  ;;  %s456_s17 = smov [#allocation2]  }
  0x23   : > { %p358_p2 = scmp.ne.s32.totalorder %s541_s29, %s357_s16  ;;  %s362_s22 = sshll.u32 %s456_s17, 4  ;;  %s363_s22 = int_to_ptr.vmem [resolvable:$false] %s362_s22 }
  0x24   : > { %s364_s23 = scalar_lea.vmem %s363_s22, 256  ;;  %p365_p9 = scmp.lt.s32.totalorder %s541_s29, %s363_s22 }
  0x25   : > { %p360_p5 = pnand %p358_p2, %p344_p3  ;;  %p366_p4 = scmp.lt.s32.totalorder %s364_s23, %s357_s16 }
  0x27   : > { %p361_p11 = pneg %p360_p5  ;;  %p367_p7 = por %p366_p4, %p365_p9 }
  0x29   : > { %p368_p10 = pnand %p367_p7, %p361_p11 }
  0x2b   : > { %371 = shalt.err (!%p368_p10)
}
  0x2c   : > { %s457_s24 = smov 64   ;;  %s458_s25 = smov 4  }
  0x2d   : > { %281 = dma.hbm_to_vmem [thread:$0]  (!%p545_p0), %s539_s27, 128, %s541_s29, %s550_s2, %s457_s24, %s457_s24, %s458_s25  }
  0x2e   : > { %p123_p12 = scmp.lt.s32.totalorder %s454_s11, 3  ;;  %p652_p1 = scmp.ge.s32.totalorder %s454_s11, 1 }
  0x30   : > { %p124_p3 = pnand %p652_p1, %p123_p12 }
  0x31   : > { %s582_s26 = sand.u32 (!%p124_p3), 1, %s438_s7  }
  0x32   : > { %127 = sbr.rel (%p124_p3) target bundleno = 101 (0x65), region = 24  ;;  %s266_s28 = sshll.u32 (!%p124_p3), %s582_s26, 3 }
  0x33   : > { %s130_s3 = scalar_lea.sflag (!%p124_p3), [#allocation3], %s582_s26  ;;  %s133_s4 = scalar_lea.vmem (!%p124_p3), [#allocation2], %s266_s28 }
  0x39   : > { %425 = dma.done.wait (%p517_p8), %s130_s3, 128  }
  0x3a   : > { %427 = vsyncadd (%p517_p8), %s130_s3, 4294967168  ;;  %v153_v0 = vld [vmem:[%s133_s4 + $0x4] sm:$0xf]  ;;  %s267_s27 = sshll.u32 %s582_s26, 2  ;;  %v152_v4 = vld [vmem:[%s133_s4] sm:$0xf] }
  0x3b   : > { %v268_v1 = vmul.f32 -1.442695, %v153_v0  ;;  %s151_s29 = scalar_lea.vmem [#allocation5], %s267_s27  ;;  %s270_s2 = sshll.u32 %s446_s9, 6 }
  0x3c   : > { %s177_s30 = sshll.u32 %s151_s29, 4  ;;  %s597_s12 = scalar_lea.hbm %s645_s1, %s270_s2  ;;  %s592_s30 = int_to_ptr.vmem [resolvable:$true] %s177_s30 }
  0x3d   : > { %338 = vpow2.f32 %v268_v1  ;;  %s163_s13 = scalar_lea.sflag [#allocation4], %s582_s26  ;;  %s372_s15 = scalar_lea.vmem %s592_s30, 64 }
  0x3e   : > { %p373_p8 = scmp.ne.s32.totalorder %s592_s30, %s372_s15  ;;  %p653_p9 = scmp.ne.s32.totalorder %s649_s19, 0 }
  0x3f   : > { %s459_s9 = smov [#allocation5]  }
  0x40   : > { %p374_p11 = pnand %p373_p8, %p653_p9  ;;  %s376_s16 = sshll.u32 %s459_s9, 4  ;;  %s377_s16 = int_to_ptr.vmem [resolvable:$false] %s376_s16 }
  0x41   : > { %s378_s17 = scalar_lea.vmem %s377_s16, 128  ;;  %p379_p6 = scmp.lt.s32.totalorder %s592_s30, %s377_s16 }
  0x42   : > { %p375_p0 = pneg %p374_p11  ;;  %p380_p13 = scmp.lt.s32.totalorder %s378_s17, %s372_s15 }
  0x44   : > { %p381_p2 = por %p380_p13, %p379_p6 }
  0x46   : > { %p382_p5 = pnand %p381_p2, %p375_p0 }
  0x47   : > { %v339_v2 = vpop.eup %338 }
  0x48   : > { %v157_v3 = vadd.f32 1.0, %v339_v2 }
  0x4a   : > { %340 = vrcp.f32 %v157_v3 }
  0x54   : > { %v341_v5 = vpop.eup %340 }
  0x55   : > { %v160_v6 = vmul.f32 %v341_v5, %v152_v4 }
  0x57   : > { %161 = vst [vmem:[%s151_s29] sm:$0xf] %v160_v6 }
  0x58   : > { %385 = shalt.err (!%p382_p5)
}
  0x59   : > { %s386_s22 = scalar_lea.hbm %s597_s12, 64  ;;  %s390_s25 = scalar_lea.hbm %s645_s1, 128 }
  0x5a   : > { %p387_p4 = scmp.ne.s32.totalorder %s597_s12, %s386_s22  ;;  %p391_p12 = scmp.lt.u32.totalorder %s597_s12, %s645_s1 }
  0x5b   : > { %p392_p1 = scmp.lt.u32.totalorder %s390_s25, %s386_s22  ;;  %p394_p8 = scmp.lt.u32.totalorder %s386_s22, %s597_s12 }
  0x5c   : > { %p388_p7 = pnand %p387_p4, %p653_p9 }
  0x5d   : > { %p393_p3 = por %p392_p1, %p391_p12 }
  0x5e   : > { %p389_p10 = pneg %p388_p7 }
  0x5f   : > { %p395_p11 = por %p394_p8, %p393_p3 }
  0x61   : > { %p396_p0 = pnand %p395_p11, %p389_p10 }
  0x63   : > { %399 = shalt.err (!%p396_p0)
}
  0x64   : > { %276 = dma.vmem_to_hbm [thread:$0]  (%p653_p9), %s592_s30, 64, %s597_s12, %s163_s13  }
  0x65 PF: > { %s189_s3 = sand.u32 1, %s434_s6   ;;  %p654_p6 = scmp.ne.s32.totalorder %s650_s21, 0 }
  0x66   : > { %p655_p13 = scmp.ge.s32.totalorder %s454_s11, 2  ;;  %s190_s4 = scalar_lea.sflag [#allocation4], %s189_s3 }
  0x68   : > { %p283_p2 = pnand %p655_p13, %p654_p6 }
  0x6a   : > { %429 = dma.done.wait (!%p283_p2), %s190_s4, 64  }
  0x6b   : > { %431 = vsyncadd (!%p283_p2), %s190_s4, 4294967232  ;;  %s17_s11 = sadd.s32 1, %s454_s11   ;;  %s656_s6 = smov %s438_s7 }
  0x6c   : > { %p14_p5 = scmp.ge.s32.totalorder %s17_s11, 4   ;;  %s657_s7 = smov %s442_s8 }
  0x6d   : > { %s658_s8 = smov %s526_s20  ;;  %s659_s9 = smov %s450_s10 }
  0x6e   : > { %s660_s10 = smov %s662_s14  ;;  %16 = sbr.rel (!%p14_p5) target bundleno = 6 (0x6), region = 69 }
  0x75   :  { %195 = vsyncpa [#allocation3], 1 }
  0x76   :  { %197 = vsyncpa [#allocation3 + $0x1], 1 }
  0x77   :  { %198 = vsyncpa [#allocation4], 1 }
  0x78   :  { %200 = vsyncpa [#allocation4 + $0x1], 1 }

</bundles_post_ra>
